<compile_context>
chip_gen: v7x
topology: tpu7x:2x2x1
jax: 0.10.0
libtpu: 0.0.40
codegen_flags: <defaults>
</compile_context>

<pallas_src>
import jax
import jax.numpy as jnp
from jax.experimental import pallas as pl
from jax.experimental.pallas import tpu as pltpu


def _downsample_kernel(x_ref, b_ref, w_ref, o_ref):
    # x_ref: (1, C_in, THog, R*2W)   VMEM  -- lane axis packs R output rows x [top row | bottom row]
    # b_ref: (R*2W, R*Wo)            VMEM  -- constant block-diagonal 2x2 avg-pool matrix (resident)
    # w_ref: (C_out, C_in)           SMEM  -- 1x1-conv weights, read as f32 scalars
    # o_ref: (1, C_out, THog, R*Wo)  VMEM  -- lane axis packs R output rows x Wo (lane-dense)
    C_in = x_ref.shape[1]
    C_out = o_ref.shape[1]
    thog = x_ref.shape[2]
    lane_in = x_ref.shape[3]

    b = b_ref[...]                      # resident constant, read once per step

    if thog == 1 or thog % 8 == 0:
        # (C, THog) -> (C*THog) is a free sublane-aligned view (THog % 8 == 0) or a squeeze.
        # One MXU pass fuses: vertical 2->1 sum, horizontal 2->1 average, W->Wo lane compaction.
        x2d = x_ref[...].reshape(C_in * thog, lane_in)
        p = jnp.dot(x2d, b, preferred_element_type=jnp.float32)     # (C_in*THog, R*Wo) f32
        pooled = [p[c * thog:(c + 1) * thog] for c in range(C_in)]
    else:
        # Odd tile heights: per-channel matmuls avoid an in-kernel sublane relayout.
        pooled = [jnp.dot(x_ref[0, c], b, preferred_element_type=jnp.float32)
                  for c in range(C_in)]

    # 1x1 conv as broadcast scalar-weight FMAs on the VPU; C_in/C_out are tiny for this module.
    # TODO(synk): for Restormer levels with C_in >= 16 (48->96, 96->192) move this channel mix
    # onto the MXU (channels on the contraction axis) -- the VPU loop would become the bottleneck.
    for co in range(C_out):
        acc = w_ref[co, 0] * pooled[0]
        for c in range(1, C_in):
            acc = acc + w_ref[co, c] * pooled[c]
        o_ref[0, co] = acc.astype(o_ref.dtype)


def _budgets():
    """(input-tile byte target, vmem_limit_bytes), tuned per TPU generation."""
    vmem_cap = None
    try:
        vmem_cap = pltpu.get_tpu_info().vmem_capacity_bytes
    except Exception:
        vmem_cap = None
    if vmem_cap is not None and vmem_cap <= 64 * 1024 * 1024:
        # v7x-like: 64 MiB physical VMEM, 2 TensorCores -> cap tiles, keep many grid steps.
        return 3 * 1024 * 1024, 32 * 1024 * 1024
    # v5e / v6e (128 MiB VMEM): bigger tiles amortize per-grid-step overhead.
    return 6 * 1024 * 1024, 48 * 1024 * 1024


def _pick_row_group(Ho, Wo):
    """Output rows packed side-by-side on the lane axis (lane-dense stores when Wo < 128)."""
    if Wo >= 128:
        return 1
    r_max = max(1, 128 // Wo)
    r_max = 1 << (r_max.bit_length() - 1)          # power of two
    r = 1
    while r * 2 <= r_max and Ho % (r * 2) == 0:
        r *= 2
    return r


def _pick_group_tile(G, grp_bytes, target_bytes, batch):
    """Lane-groups (of output rows) per grid step: multiple of 8 dividing G, sized to the VMEM
    target, while keeping enough total grid steps (>=16) for megacore + pipeline overlap."""
    if G <= 8 or G % 8 != 0:
        return G                                    # full second-to-last dim is always legal
    cap = max(8, (int(target_bytes) // max(1, grp_bytes)) // 8 * 8)
    divisors = [t for t in range(8, G + 1, 8) if G % t == 0 and t <= cap]
    if not divisors:
        return 8
    roomy = [t for t in divisors if (G // t) * batch >= 16]
    return max(roomy) if roomy else max(divisors)


def downsample_pallas(x_nchw, weight):
    """x_nchw: (N, C_in, H, W) contiguous NCHW; weight: (C_out, C_in) (== conv weight[:, :, 0, 0]).

    Returns (N, C_out, H//2, W//2), same dtype as x.
    """
    N, C, H, W = x_nchw.shape
    assert H % 2 == 0 and W % 2 == 0, "bilinear scale=0.5 == 2x2 avg-pool only for even H, W"
    # TODO(synk): odd H/W would need true bilinear edge handling; not used by Restormer shapes.
    Ho, Wo = H // 2, W // 2
    weight = weight.reshape(weight.shape[0], -1).astype(jnp.float32)   # f32 scalars for SMEM
    C_out = weight.shape[0]

    tile_target, vmem_limit = _budgets()

    # Lane grouping: R output rows share one lane-axis group.
    R = _pick_row_group(Ho, Wo)
    G = Ho // R                                     # lane-groups along the output-row axis
    grp_bytes = C * R * 2 * W * x_nchw.dtype.itemsize

    # Keep the tiled/pipelined path when G is not a multiple of 8 but too big for one block:
    # zero-pad a few output rows (no bias -> padded rows are zero) and slice them off at the end.
    pad_g = 0
    if G % 8 != 0 and G > 8 and G * grp_bytes > tile_target:
        pad_g = (-G) % 8
        x_nchw = jnp.pad(x_nchw, ((0, 0), (0, 0), (0, pad_g * 2 * R), (0, 0)))
        G += pad_g
    Ho_p = G * R

    THog = _pick_group_tile(G, grp_bytes, tile_target, N)

    # FREE reshape of the contiguous NCHW buffer (pure re-indexing, no data movement):
    # (N, C, H, W) -> (N, C, G, R*2W); each lane-group holds R output rows, each as [top | bottom].
    twoW = 2 * W
    x_r = x_nchw.reshape(N, C, G, R * twoW)

    # Constant block-diagonal pooling matrix: 4 entries of 0.25 per output lane
    # (top/bottom source row x left/right column), built in the input dtype (0.25 exact in bf16).
    m_in = jnp.arange(R * twoW)
    m_out = jnp.arange(R * Wo)
    r_in, k = m_in // twoW, m_in % twoW
    r_out, j = m_out // Wo, m_out % Wo
    col = k % W
    hit = (r_in[:, None] == r_out[None, :]) & ((col[:, None] // 2) == j[None, :])
    b_dtype = jnp.bfloat16 if x_nchw.dtype == jnp.bfloat16 else jnp.float32
    B = jnp.where(hit, 0.25, 0.0).astype(b_dtype)

    grid = (N, G // THog)

    out = pl.pallas_call(
        _downsample_kernel,
        out_shape=jax.ShapeDtypeStruct((N, C_out, G, R * Wo), x_nchw.dtype),
        grid_spec=pltpu.PrefetchScalarGridSpec(
            num_scalar_prefetch=0,
            grid=grid,
            in_specs=[
                pl.BlockSpec((1, C, THog, R * twoW), lambda n, t: (n, 0, t, 0)),
                pl.BlockSpec((R * twoW, R * Wo), lambda n, t: (0, 0)),   # resident constant
                pl.BlockSpec(memory_space=pltpu.MemorySpace.SMEM),       # 1x1 weights as scalars
            ],
            out_specs=pl.BlockSpec((1, C_out, THog, R * Wo), lambda n, t: (n, 0, t, 0)),
        ),
        compiler_params=pltpu.CompilerParams(
            dimension_semantics=("parallel", "parallel"),
            vmem_limit_bytes=vmem_limit,
        ),
    )(x_r, B, weight)

    # FREE reshape back to NCHW; slice off padded rows if any.
    out = out.reshape(N, C_out, Ho_p, Wo)
    if pad_g:
        out = out[:, :, :Ho, :]
    return out


def downsample_reference(x_nchw, weight):
    """Pure-JAX reference: 2x2 avg pool + 1x1 conv (weight is (C_out, C_in))."""
    N, C, H, W = x_nchw.shape
    pooled = x_nchw.reshape(N, C, H // 2, 2, W // 2, 2).mean(axis=(3, 5))   # (N, C, Ho, Wo)
    return jnp.einsum('nchw,oc->nohw', pooled, weight.reshape(weight.shape[0], -1))


if __name__ == "__main__":
    # Module config: in_channels=4, s_factor=4 -> 1x1 conv maps 4 -> 8 channels.
    in_channels, s_factor = 4, 4
    N, H, W = 2, 16, 16

    key = jax.random.PRNGKey(0)
    kx, kw = jax.random.split(key)
    x = jax.random.normal(kx, (N, in_channels, H, W), dtype=jnp.float32)
    # PyTorch Conv2d weight shape (C_out, C_in, 1, 1) -> pass as (C_out, C_in).
    w = (jax.random.normal(kw, (in_channels + s_factor, in_channels), dtype=jnp.float32)
         * (1.0 / jnp.sqrt(in_channels)))

    y = downsample_pallas(x, w)
    y = jax.block_until_ready(y)

    y_ref = downsample_reference(x, w)
    assert y.shape == (N, in_channels + s_factor, H // 2, W // 2)
    assert jnp.allclose(y, y_ref, atol=1e-5, rtol=1e-5)

    print("KERNEL_OK")
</pallas_src>

<mosaic_0001>
module attributes {stable_mosaic.version = 11 : i64} {
  func.func @_downsample_kernel(%arg0: i32, %arg1: i32, %arg2: memref<1x4x1x256xf32, #tpu.memory_space<vmem>>, %arg3: memref<256x64xf32, #tpu.memory_space<vmem>>, %arg4: memref<8x4xf32, #tpu.memory_space<smem>>, %arg5: memref<1x8x1x64xf32, #tpu.memory_space<vmem>>) attributes {dimension_semantics = [#tpu.dimension_semantics<parallel>, #tpu.dimension_semantics<parallel>], iteration_bounds = array<i64: 2, 1>, scalar_prefetch = 0 : i64, scratch_operands = 0 : i64, tpu.core_type = #tpu.core_type<tc>, window_params = [{transform_indices = @transform_0, window_bounds = array<i64: 1, 4, 1, 256>}, {pipeline_mode = #tpu.pipeline_mode<synchronous>, transform_indices = @transform_1, window_bounds = array<i64: 256, 64>}, {transform_indices = @transform_2, window_bounds = array<i64: 8, 4>}, {transform_indices = @transform_3, window_bounds = array<i64: 1, 8, 1, 64>}]} {
    %c0 = arith.constant 0 : index
    %c0_0 = arith.constant 0 : index
    %0 = vector.load %arg3[%c0, %c0_0] : memref<256x64xf32, #tpu.memory_space<vmem>>, vector<256x64xf32>
    %c0_1 = arith.constant 0 : index
    %c0_2 = arith.constant 0 : index
    %c0_3 = arith.constant 0 : index
    %c0_4 = arith.constant 0 : index
    %1 = vector.load %arg2[%c0_1, %c0_2, %c0_3, %c0_4] : memref<1x4x1x256xf32, #tpu.memory_space<vmem>>, vector<1x4x1x256xf32>
    %2 = vector.shape_cast %1 : vector<1x4x1x256xf32> to vector<4x256xf32>
    %cst = arith.constant dense<0.000000e+00> : vector<4x64xf32>
    %3 = tpu.matmul %2, %0, %cst {dimension_numbers = #tpu.dot_dimension_numbers<[1], [0], [0], [1], [0, 0, 1, 1], [], []>} : vector<4x256xf32>, vector<256x64xf32>, vector<4x64xf32> -> vector<4x64xf32>
    %4 = vector.extract_strided_slice %3 {offsets = [0, 0], sizes = [1, 64], strides = [1, 1]} : vector<4x64xf32> to vector<1x64xf32>
    %5 = vector.extract_strided_slice %3 {offsets = [1, 0], sizes = [1, 64], strides = [1, 1]} : vector<4x64xf32> to vector<1x64xf32>
    %6 = vector.extract_strided_slice %3 {offsets = [2, 0], sizes = [1, 64], strides = [1, 1]} : vector<4x64xf32> to vector<1x64xf32>
    %7 = vector.extract_strided_slice %3 {offsets = [3, 0], sizes = [1, 64], strides = [1, 1]} : vector<4x64xf32> to vector<1x64xf32>
    %c0_5 = arith.constant 0 : index
    %c0_6 = arith.constant 0 : index
    %8 = memref.load %arg4[%c0_5, %c0_6] : memref<8x4xf32, #tpu.memory_space<smem>>
    %9 = vector.broadcast %8 : f32 to vector<1x64xf32>
    %10 = arith.mulf %9, %4 : vector<1x64xf32>
    %c0_7 = arith.constant 0 : index
    %c1 = arith.constant 1 : index
    %11 = memref.load %arg4[%c0_7, %c1] : memref<8x4xf32, #tpu.memory_space<smem>>
    %12 = vector.broadcast %11 : f32 to vector<1x64xf32>
    %13 = arith.mulf %12, %5 : vector<1x64xf32>
    %14 = arith.addf %10, %13 : vector<1x64xf32>
    %c0_8 = arith.constant 0 : index
    %c2 = arith.constant 2 : index
    %15 = memref.load %arg4[%c0_8, %c2] : memref<8x4xf32, #tpu.memory_space<smem>>
    %16 = vector.broadcast %15 : f32 to vector<1x64xf32>
    %17 = arith.mulf %16, %6 : vector<1x64xf32>
    %18 = arith.addf %14, %17 : vector<1x64xf32>
    %c0_9 = arith.constant 0 : index
    %c3 = arith.constant 3 : index
    %19 = memref.load %arg4[%c0_9, %c3] : memref<8x4xf32, #tpu.memory_space<smem>>
    %20 = vector.broadcast %19 : f32 to vector<1x64xf32>
    %21 = arith.mulf %20, %7 : vector<1x64xf32>
    %22 = arith.addf %18, %21 : vector<1x64xf32>
    %c0_10 = arith.constant 0 : index
    %c0_11 = arith.constant 0 : index
    %c0_12 = arith.constant 0 : index
    %c0_13 = arith.constant 0 : index
    %23 = vector.load %arg5[%c0_10, %c0_11, %c0_12, %c0_13] : memref<1x8x1x64xf32, #tpu.memory_space<vmem>>, vector<1x1x1x64xf32>
    %24 = vector.shape_cast %23 : vector<1x1x1x64xf32> to vector<1x64xf32>
    %25 = vector.shape_cast %22 : vector<1x64xf32> to vector<1x1x1x64xf32>
    tpu.vector_store %arg5[%c0_10, %c0_11, %c0_12, %c0_13], %25 {strides = array<i32>} : memref<1x8x1x64xf32, #tpu.memory_space<vmem>>, vector<1x1x1x64xf32>,
    %c1_14 = arith.constant 1 : index
    %c0_15 = arith.constant 0 : index
    %26 = memref.load %arg4[%c1_14, %c0_15] : memref<8x4xf32, #tpu.memory_space<smem>>
    %27 = vector.broadcast %26 : f32 to vector<1x64xf32>
    %28 = arith.mulf %27, %4 : vector<1x64xf32>
    %c1_16 = arith.constant 1 : index
    %c1_17 = arith.constant 1 : index
    %29 = memref.load %arg4[%c1_16, %c1_17] : memref<8x4xf32, #tpu.memory_space<smem>>
    %30 = vector.broadcast %29 : f32 to vector<1x64xf32>
    %31 = arith.mulf %30, %5 : vector<1x64xf32>
    %32 = arith.addf %28, %31 : vector<1x64xf32>
    %c1_18 = arith.constant 1 : index
    %c2_19 = arith.constant 2 : index
    %33 = memref.load %arg4[%c1_18, %c2_19] : memref<8x4xf32, #tpu.memory_space<smem>>
    %34 = vector.broadcast %33 : f32 to vector<1x64xf32>
    %35 = arith.mulf %34, %6 : vector<1x64xf32>
    %36 = arith.addf %32, %35 : vector<1x64xf32>
    %c1_20 = arith.constant 1 : index
    %c3_21 = arith.constant 3 : index
    %37 = memref.load %arg4[%c1_20, %c3_21] : memref<8x4xf32, #tpu.memory_space<smem>>
    %38 = vector.broadcast %37 : f32 to vector<1x64xf32>
    %39 = arith.mulf %38, %7 : vector<1x64xf32>
    %40 = arith.addf %36, %39 : vector<1x64xf32>
    %c0_22 = arith.constant 0 : index
    %c1_23 = arith.constant 1 : index
    %c0_24 = arith.constant 0 : index
    %c0_25 = arith.constant 0 : index
    %41 = vector.load %arg5[%c0_22, %c1_23, %c0_24, %c0_25] : memref<1x8x1x64xf32, #tpu.memory_space<vmem>>, vector<1x1x1x64xf32>
    %42 = vector.shape_cast %41 : vector<1x1x1x64xf32> to vector<1x64xf32>
    %43 = vector.shape_cast %40 : vector<1x64xf32> to vector<1x1x1x64xf32>
    tpu.vector_store %arg5[%c0_22, %c1_23, %c0_24, %c0_25], %43 {strides = array<i32>} : memref<1x8x1x64xf32, #tpu.memory_space<vmem>>, vector<1x1x1x64xf32>,
    %c2_26 = arith.constant 2 : index
    %c0_27 = arith.constant 0 : index
    %44 = memref.load %arg4[%c2_26, %c0_27] : memref<8x4xf32, #tpu.memory_space<smem>>
    %45 = vector.broadcast %44 : f32 to vector<1x64xf32>
    %46 = arith.mulf %45, %4 : vector<1x64xf32>
    %c2_28 = arith.constant 2 : index
    %c1_29 = arith.constant 1 : index
    %47 = memref.load %arg4[%c2_28, %c1_29] : memref<8x4xf32, #tpu.memory_space<smem>>
    %48 = vector.broadcast %47 : f32 to vector<1x64xf32>
    %49 = arith.mulf %48, %5 : vector<1x64xf32>
    %50 = arith.addf %46, %49 : vector<1x64xf32>
    %c2_30 = arith.constant 2 : index
    %c2_31 = arith.constant 2 : index
    %51 = memref.load %arg4[%c2_30, %c2_31] : memref<8x4xf32, #tpu.memory_space<smem>>
    %52 = vector.broadcast %51 : f32 to vector<1x64xf32>
    %53 = arith.mulf %52, %6 : vector<1x64xf32>
    %54 = arith.addf %50, %53 : vector<1x64xf32>
    %c2_32 = arith.constant 2 : index
    %c3_33 = arith.constant 3 : index
    %55 = memref.load %arg4[%c2_32, %c3_33] : memref<8x4xf32, #tpu.memory_space<smem>>
    %56 = vector.broadcast %55 : f32 to vector<1x64xf32>
    %57 = arith.mulf %56, %7 : vector<1x64xf32>
    %58 = arith.addf %54, %57 : vector<1x64xf32>
    %c0_34 = arith.constant 0 : index
    %c2_35 = arith.constant 2 : index
    %c0_36 = arith.constant 0 : index
    %c0_37 = arith.constant 0 : index
    %59 = vector.load %arg5[%c0_34, %c2_35, %c0_36, %c0_37] : memref<1x8x1x64xf32, #tpu.memory_space<vmem>>, vector<1x1x1x64xf32>
    %60 = vector.shape_cast %59 : vector<1x1x1x64xf32> to vector<1x64xf32>
    %61 = vector.shape_cast %58 : vector<1x64xf32> to vector<1x1x1x64xf32>
    tpu.vector_store %arg5[%c0_34, %c2_35, %c0_36, %c0_37], %61 {strides = array<i32>} : memref<1x8x1x64xf32, #tpu.memory_space<vmem>>, vector<1x1x1x64xf32>,
    %c3_38 = arith.constant 3 : index
    %c0_39 = arith.constant 0 : index
    %62 = memref.load %arg4[%c3_38, %c0_39] : memref<8x4xf32, #tpu.memory_space<smem>>
    %63 = vector.broadcast %62 : f32 to vector<1x64xf32>
    %64 = arith.mulf %63, %4 : vector<1x64xf32>
    %c3_40 = arith.constant 3 : index
    %c1_41 = arith.constant 1 : index
    %65 = memref.load %arg4[%c3_40, %c1_41] : memref<8x4xf32, #tpu.memory_space<smem>>
    %66 = vector.broadcast %65 : f32 to vector<1x64xf32>
    %67 = arith.mulf %66, %5 : vector<1x64xf32>
    %68 = arith.addf %64, %67 : vector<1x64xf32>
    %c3_42 = arith.constant 3 : index
    %c2_43 = arith.constant 2 : index
    %69 = memref.load %arg4[%c3_42, %c2_43] : memref<8x4xf32, #tpu.memory_space<smem>>
    %70 = vector.broadcast %69 : f32 to vector<1x64xf32>
    %71 = arith.mulf %70, %6 : vector<1x64xf32>
    %72 = arith.addf %68, %71 : vector<1x64xf32>
    %c3_44 = arith.constant 3 : index
    %c3_45 = arith.constant 3 : index
    %73 = memref.load %arg4[%c3_44, %c3_45] : memref<8x4xf32, #tpu.memory_space<smem>>
    %74 = vector.broadcast %73 : f32 to vector<1x64xf32>
    %75 = arith.mulf %74, %7 : vector<1x64xf32>
    %76 = arith.addf %72, %75 : vector<1x64xf32>
    %c0_46 = arith.constant 0 : index
    %c3_47 = arith.constant 3 : index
    %c0_48 = arith.constant 0 : index
    %c0_49 = arith.constant 0 : index
    %77 = vector.load %arg5[%c0_46, %c3_47, %c0_48, %c0_49] : memref<1x8x1x64xf32, #tpu.memory_space<vmem>>, vector<1x1x1x64xf32>
    %78 = vector.shape_cast %77 : vector<1x1x1x64xf32> to vector<1x64xf32>
    %79 = vector.shape_cast %76 : vector<1x64xf32> to vector<1x1x1x64xf32>
    tpu.vector_store %arg5[%c0_46, %c3_47, %c0_48, %c0_49], %79 {strides = array<i32>} : memref<1x8x1x64xf32, #tpu.memory_space<vmem>>, vector<1x1x1x64xf32>,
    %c4 = arith.constant 4 : index
    %c0_50 = arith.constant 0 : index
    %80 = memref.load %arg4[%c4, %c0_50] : memref<8x4xf32, #tpu.memory_space<smem>>
    %81 = vector.broadcast %80 : f32 to vector<1x64xf32>
    %82 = arith.mulf %81, %4 : vector<1x64xf32>
    %c4_51 = arith.constant 4 : index
    %c1_52 = arith.constant 1 : index
    %83 = memref.load %arg4[%c4_51, %c1_52] : memref<8x4xf32, #tpu.memory_space<smem>>
    %84 = vector.broadcast %83 : f32 to vector<1x64xf32>
    %85 = arith.mulf %84, %5 : vector<1x64xf32>
    %86 = arith.addf %82, %85 : vector<1x64xf32>
    %c4_53 = arith.constant 4 : index
    %c2_54 = arith.constant 2 : index
    %87 = memref.load %arg4[%c4_53, %c2_54] : memref<8x4xf32, #tpu.memory_space<smem>>
    %88 = vector.broadcast %87 : f32 to vector<1x64xf32>
    %89 = arith.mulf %88, %6 : vector<1x64xf32>
    %90 = arith.addf %86, %89 : vector<1x64xf32>
    %c4_55 = arith.constant 4 : index
    %c3_56 = arith.constant 3 : index
    %91 = memref.load %arg4[%c4_55, %c3_56] : memref<8x4xf32, #tpu.memory_space<smem>>
    %92 = vector.broadcast %91 : f32 to vector<1x64xf32>
    %93 = arith.mulf %92, %7 : vector<1x64xf32>
    %94 = arith.addf %90, %93 : vector<1x64xf32>
    %c0_57 = arith.constant 0 : index
    %c4_58 = arith.constant 4 : index
    %c0_59 = arith.constant 0 : index
    %c0_60 = arith.constant 0 : index
    %95 = vector.load %arg5[%c0_57, %c4_58, %c0_59, %c0_60] : memref<1x8x1x64xf32, #tpu.memory_space<vmem>>, vector<1x1x1x64xf32>
    %96 = vector.shape_cast %95 : vector<1x1x1x64xf32> to vector<1x64xf32>
    %97 = vector.shape_cast %94 : vector<1x64xf32> to vector<1x1x1x64xf32>
    tpu.vector_store %arg5[%c0_57, %c4_58, %c0_59, %c0_60], %97 {strides = array<i32>} : memref<1x8x1x64xf32, #tpu.memory_space<vmem>>, vector<1x1x1x64xf32>,
    %c5 = arith.constant 5 : index
    %c0_61 = arith.constant 0 : index
    %98 = memref.load %arg4[%c5, %c0_61] : memref<8x4xf32, #tpu.memory_space<smem>>
    %99 = vector.broadcast %98 : f32 to vector<1x64xf32>
    %100 = arith.mulf %99, %4 : vector<1x64xf32>
    %c5_62 = arith.constant 5 : index
    %c1_63 = arith.constant 1 : index
    %101 = memref.load %arg4[%c5_62, %c1_63] : memref<8x4xf32, #tpu.memory_space<smem>>
    %102 = vector.broadcast %101 : f32 to vector<1x64xf32>
    %103 = arith.mulf %102, %5 : vector<1x64xf32>
    %104 = arith.addf %100, %103 : vector<1x64xf32>
    %c5_64 = arith.constant 5 : index
    %c2_65 = arith.constant 2 : index
    %105 = memref.load %arg4[%c5_64, %c2_65] : memref<8x4xf32, #tpu.memory_space<smem>>
    %106 = vector.broadcast %105 : f32 to vector<1x64xf32>
    %107 = arith.mulf %106, %6 : vector<1x64xf32>
    %108 = arith.addf %104, %107 : vector<1x64xf32>
    %c5_66 = arith.constant 5 : index
    %c3_67 = arith.constant 3 : index
    %109 = memref.load %arg4[%c5_66, %c3_67] : memref<8x4xf32, #tpu.memory_space<smem>>
    %110 = vector.broadcast %109 : f32 to vector<1x64xf32>
    %111 = arith.mulf %110, %7 : vector<1x64xf32>
    %112 = arith.addf %108, %111 : vector<1x64xf32>
    %c0_68 = arith.constant 0 : index
    %c5_69 = arith.constant 5 : index
    %c0_70 = arith.constant 0 : index
    %c0_71 = arith.constant 0 : index
    %113 = vector.load %arg5[%c0_68, %c5_69, %c0_70, %c0_71] : memref<1x8x1x64xf32, #tpu.memory_space<vmem>>, vector<1x1x1x64xf32>
    %114 = vector.shape_cast %113 : vector<1x1x1x64xf32> to vector<1x64xf32>
    %115 = vector.shape_cast %112 : vector<1x64xf32> to vector<1x1x1x64xf32>
    tpu.vector_store %arg5[%c0_68, %c5_69, %c0_70, %c0_71], %115 {strides = array<i32>} : memref<1x8x1x64xf32, #tpu.memory_space<vmem>>, vector<1x1x1x64xf32>,
    %c6 = arith.constant 6 : index
    %c0_72 = arith.constant 0 : index
    %116 = memref.load %arg4[%c6, %c0_72] : memref<8x4xf32, #tpu.memory_space<smem>>
    %117 = vector.broadcast %116 : f32 to vector<1x64xf32>
    %118 = arith.mulf %117, %4 : vector<1x64xf32>
    %c6_73 = arith.constant 6 : index
    %c1_74 = arith.constant 1 : index
    %119 = memref.load %arg4[%c6_73, %c1_74] : memref<8x4xf32, #tpu.memory_space<smem>>
    %120 = vector.broadcast %119 : f32 to vector<1x64xf32>
    %121 = arith.mulf %120, %5 : vector<1x64xf32>
    %122 = arith.addf %118, %121 : vector<1x64xf32>
    %c6_75 = arith.constant 6 : index
    %c2_76 = arith.constant 2 : index
    %123 = memref.load %arg4[%c6_75, %c2_76] : memref<8x4xf32, #tpu.memory_space<smem>>
    %124 = vector.broadcast %123 : f32 to vector<1x64xf32>
    %125 = arith.mulf %124, %6 : vector<1x64xf32>
    %126 = arith.addf %122, %125 : vector<1x64xf32>
    %c6_77 = arith.constant 6 : index
    %c3_78 = arith.constant 3 : index
    %127 = memref.load %arg4[%c6_77, %c3_78] : memref<8x4xf32, #tpu.memory_space<smem>>
    %128 = vector.broadcast %127 : f32 to vector<1x64xf32>
    %129 = arith.mulf %128, %7 : vector<1x64xf32>
    %130 = arith.addf %126, %129 : vector<1x64xf32>
    %c0_79 = arith.constant 0 : index
    %c6_80 = arith.constant 6 : index
    %c0_81 = arith.constant 0 : index
    %c0_82 = arith.constant 0 : index
    %131 = vector.load %arg5[%c0_79, %c6_80, %c0_81, %c0_82] : memref<1x8x1x64xf32, #tpu.memory_space<vmem>>, vector<1x1x1x64xf32>
    %132 = vector.shape_cast %131 : vector<1x1x1x64xf32> to vector<1x64xf32>
    %133 = vector.shape_cast %130 : vector<1x64xf32> to vector<1x1x1x64xf32>
    tpu.vector_store %arg5[%c0_79, %c6_80, %c0_81, %c0_82], %133 {strides = array<i32>} : memref<1x8x1x64xf32, #tpu.memory_space<vmem>>, vector<1x1x1x64xf32>,
    %c7 = arith.constant 7 : index
    %c0_83 = arith.constant 0 : index
    %134 = memref.load %arg4[%c7, %c0_83] : memref<8x4xf32, #tpu.memory_space<smem>>
    %135 = vector.broadcast %134 : f32 to vector<1x64xf32>
    %136 = arith.mulf %135, %4 : vector<1x64xf32>
    %c7_84 = arith.constant 7 : index
    %c1_85 = arith.constant 1 : index
    %137 = memref.load %arg4[%c7_84, %c1_85] : memref<8x4xf32, #tpu.memory_space<smem>>
    %138 = vector.broadcast %137 : f32 to vector<1x64xf32>
    %139 = arith.mulf %138, %5 : vector<1x64xf32>
    %140 = arith.addf %136, %139 : vector<1x64xf32>
    %c7_86 = arith.constant 7 : index
    %c2_87 = arith.constant 2 : index
    %141 = memref.load %arg4[%c7_86, %c2_87] : memref<8x4xf32, #tpu.memory_space<smem>>
    %142 = vector.broadcast %141 : f32 to vector<1x64xf32>
    %143 = arith.mulf %142, %6 : vector<1x64xf32>
    %144 = arith.addf %140, %143 : vector<1x64xf32>
    %c7_88 = arith.constant 7 : index
    %c3_89 = arith.constant 3 : index
    %145 = memref.load %arg4[%c7_88, %c3_89] : memref<8x4xf32, #tpu.memory_space<smem>>
    %146 = vector.broadcast %145 : f32 to vector<1x64xf32>
    %147 = arith.mulf %146, %7 : vector<1x64xf32>
    %148 = arith.addf %144, %147 : vector<1x64xf32>
    %c0_90 = arith.constant 0 : index
    %c7_91 = arith.constant 7 : index
    %c0_92 = arith.constant 0 : index
    %c0_93 = arith.constant 0 : index
    %149 = vector.load %arg5[%c0_90, %c7_91, %c0_92, %c0_93] : memref<1x8x1x64xf32, #tpu.memory_space<vmem>>, vector<1x1x1x64xf32>
    %150 = vector.shape_cast %149 : vector<1x1x1x64xf32> to vector<1x64xf32>
    %151 = vector.shape_cast %148 : vector<1x64xf32> to vector<1x1x1x64xf32>
    tpu.vector_store %arg5[%c0_90, %c7_91, %c0_92, %c0_93], %151 {strides = array<i32>} : memref<1x8x1x64xf32, #tpu.memory_space<vmem>>, vector<1x1x1x64xf32>,
    return
  }
  func.func @transform_0(%arg0: i32, %arg1: i32) -> (i32, i32, i32, i32) {
    %c0_i32 = arith.constant 0 : i32
    %c0_i32_0 = arith.constant 0 : i32
    %c0_i32_1 = arith.constant 0 : i32
    return %arg0, %c0_i32, %arg1, %c0_i32_0 : i32, i32, i32, i32
  }
  func.func @transform_1(%arg0: i32, %arg1: i32) -> (i32, i32) {
    %c0_i32 = arith.constant 0 : i32
    %c0_i32_0 = arith.constant 0 : i32
    %c0_i32_1 = arith.constant 0 : i32
    return %c0_i32, %c0_i32_0 : i32, i32
  }
  func.func @transform_2(%arg0: i32, %arg1: i32) -> (i32, i32) {
    %c0_i32 = arith.constant 0 : i32
    %c0_i32_0 = arith.constant 0 : i32
    %c0_i32_1 = arith.constant 0 : i32
    return %c0_i32, %c0_i32_0 : i32, i32
  }
  func.func @transform_3(%arg0: i32, %arg1: i32) -> (i32, i32, i32, i32) {
    %c0_i32 = arith.constant 0 : i32
    %c0_i32_0 = arith.constant 0 : i32
    %c0_i32_1 = arith.constant 0 : i32
    return %arg0, %c0_i32, %arg1, %c0_i32_0 : i32, i32, i32, i32
  }
}

</mosaic_0001>

<bundles_post_ra>
// kernel: tpu_custom_call.1
= control target key start
LH: loop header
LB: loop body
LE: loop exit
PB: predicated region body
PF: predicated region fallthrough
CT: control target
= control target key end

     0   :  { %s1385_s0 = inlined_call_operand.vmem [shape: f32[2,4,1,256], index: 0, kind: input, shape index: {}]   ;;  %s1386_s1 = inlined_call_operand.vmem [shape: f32[256,64], index: 1, kind: input, shape index: {}]   ;;  %s1387_s2 = inlined_call_operand.vmem [shape: f32[8,4], index: 2, kind: input, shape index: {}]   ;;  %s1388_s3 = inlined_call_operand.hbm [shape: f32[2,8,1,64], index: 3, kind: output, shape index: {}]  }
   0x1   :  { %1403 = sst [smem:[#allocation19_spill]] %s1385_s0 }
   0x2   :  { %1404 = sst [smem:[#allocation20_spill]] %s1386_s1 }
   0x3   :  { %1405 = sst [smem:[#allocation21_spill]] %s1387_s2 }
   0x4   :  { %1406 = sst [smem:[#allocation22_spill]] %s1388_s3 }
   0x5   :  { %8 = vsyncpa [#allocation4], 0 }
   0x6   :  { %9 = vsyncpa [#allocation3], 0 }
   0x7   :  { %11 = vsyncpa [#allocation3 + $0x1], 0  ;;  %s978_s12 = smov 0   ;;  %s980_s13 = smov 0  }
   0x8   :  { %s982_s14 = smov 0   ;;  %s984_s15 = smov 0  }
   0x9   :  { %s986_s16 = smov 0   ;;  %s988_s17 = smov 0  }
   0xa LB: > { %1407 = sst [smem:[#allocation8_spill]] %s931_s12  ;;  %s665_s18 = sadd.s32 4294967295, %s951_s17   ;;  %s951_s17 = sphi %s988_s17, %s17_s17   ;;  %s947_s16 = sphi %s986_s16, %s1438_s16   ;;  %s943_s15 = sphi %s984_s15, %s1437_s15   ;;  %s939_s14 = sphi %s982_s14, %s1436_s14   ;;  %s935_s13 = sphi %s980_s13, %s1435_s13   ;;  %s931_s12 = sphi %s978_s12, %s1434_s12  }
   0xb   : > { %1408 = sst [smem:[#allocation9_spill]] %s935_s13  ;;  %s666_s19 = sadd.s32 4294967294, %s951_s17  }
   0xc   : > { %1409 = sst [smem:[#allocation10_spill]] %s939_s14  ;;  %s29_s20 = sadd.s32 1, %s947_s16 }
   0xd   : > { %1410 = sst [smem:[#allocation11_spill]] %s943_s15  ;;  %s108_s21 = sadd.s32 1, %s939_s14 }
   0xe   : > { %1411 = sst [smem:[#allocation12_spill]] %s947_s16  ;;  %p31_p0 = scmp.ge.s32.totalorder %s29_s20, 2 }
   0xf   : > { %1412 = sst [smem:[#allocation13_spill]] %s951_s17  ;;  %p118_p1 = scmp.ne.s32.totalorder %s939_s14, %s935_s13 }
  0x10   : > { %p119_p2 = scmp.eq.s32.totalorder %s665_s18, 1  ;;  %p124_p3 = scmp.ne.s32.totalorder %s935_s13, %s931_s12 }
  0x11   : > { %s1440_s20 = smov (%p31_p0, %s29_s20), 0  ;;  %p125_p5 = scmp.eq.s32.totalorder %s666_s19, 1 }
  0x12   : > { %1413 = sst [smem:[#allocation14_spill]] %s1440_s20  ;;  %p1018_p4 = por %p119_p2, %p118_p1 }
  0x13   : > { %s103_s23 = ssub.s32 %s947_s16, %s1440_s20  ;;  %p667_p6 = scmp.ge.s32.totalorder %s951_s17, 1 }
  0x14   : > { %s1414_s22 = scalar_select %p1018_p4, 1, 0 }
  0x15   : > { %p106_p7 = scmp.eq.s32.totalorder %s103_s23, 0  ;;  %p1025_p8 = por %p125_p5, %p124_p3 }
  0x16   : > { %1415 = sst [smem:[#allocation15_spill]] %s1414_s22  ;;  %p132_p9 = scmp.lt.s32.totalorder %s951_s17, 3 }
  0x17   : > { %s1416_s24 = scalar_select %p1025_p8, 1, 0 }
  0x18   : > { %s1031_s25 = scalar_select %p106_p7, %s939_s14, %s108_s21  }
  0x19   : > { %1417 = sst [smem:[#allocation16_spill]] %s1416_s24  ;;  %p1033_p10 = pnand %p667_p6, %p132_p9 }
  0x1a   : > { %1418 = sst [smem:[#allocation17_spill]] %s1031_s25  ;;  %p1037_p11 = scmp.eq.s32.totalorder %s665_s18, 0 }
  0x1b   : > { %s1421_s2 = sld [smem:[#allocation21_spill]]  ;;  %p791_p12 = pneg %p1033_p10 }
  0x1d   : > { %p792_p13 = pnand %p1037_p11, %p791_p12 }
  0x1f   : > { %p856_p1 = pneg %p792_p13 }
  0x21   : > { %s148_s30 = sshll.u32 %s1421_s2, 4  ;;  %s149_s30 = int_to_ptr.vmem [resolvable:$true] %s148_s30 }
  0x22   : > { %s854_s4 = scalar_lea.vmem %s149_s30, 128  ;;  %p862_p5 = scmp.lt.s32.totalorder %s149_s30, %s149_s30 }
  0x23   : > { %p855_p0 = scmp.ne.s32.totalorder %s149_s30, %s854_s4  ;;  %p863_p6 = scmp.lt.s32.totalorder %s854_s4, %s854_s4 }
  0x25   : > { %p857_p2 = pnand %p856_p1, %p855_p0  ;;  %p864_p7 = por %p863_p6, %p862_p5 }
  0x27   : > { %p858_p3 = pneg %p857_p2 }
  0x29   : > { %p865_p9 = pnand %p864_p7, %p858_p3 }
  0x2b   : > { %868 = shalt.err (!%p865_p9)
}
  0x2c   : > { %s953_s5 = smov [#allocation2]   ;;  %172 = sbr.rel (%p1033_p10) target bundleno = 350 (0x15e), region = 32 }
  0x2d   : > { %794 = dma.vmem_to_smem (!%p792_p13), %s149_s30, 128, %s953_s5, [#allocation4]  }
  0x33   : > { %922 = dma.done.wait (%p1037_p11), [#allocation4], 128  }
  0x34   : > { %924 = vsyncadd (%p1037_p11), [#allocation4], 4294967168 }
  0x35   : > { %178 = sfence }
  0x36   : > { %s1422_s1 = sld [smem:[#allocation20_spill]]  ;;  %p200_p10 = scmp.lt.s32.totalorder %s943_s15, 1  ;;  %v954_v12 = vmov 1966171168   ;;  %v253_v14 = vlaneseq  ;;  %vm376_vm0 = vcmask 516096  }
  0x37   : > { %v251_v13 = vunpack.c.l.s4 %v954_v12  ;;  %s1423_s0 = sld [smem:[#allocation19_spill]]  ;;  %s1157_s8 = sld [smem:[#allocation2 + $0x1]] }
  0x38   : > { %s201_s7 = scalar_select %p200_p10, %s943_s15, 1  ;;  %v254_v23 = vshrl.u32 %v253_v14, 7 }
  0x39   : > { %v252_v22 = vunpack.c.0.s8 %v251_v13  ;;  %s1159_s9 = sld [smem:[#allocation2 + $0x2]]  ;;  %s1161_s11 = sld [smem:[#allocation2 + $0x3]] }
  0x3a   : > { %s673_s10 = sshll.u32 %s201_s7, 3  ;;  %s1155_s7 = sld [smem:[#allocation2]] }
  0x3b   : > { %v255_v31 = vsub.s32 %v252_v22, %v254_v23  ;;  %s1163_s18 = sld [smem:[#allocation2 + $0x80]]  ;;  %s1165_s19 = sld [smem:[#allocation2 + $0x81]] }
  0x3c   : > { %v224_v0 = vld [vmem:[%s1422_s1 + $0x80] sm:$0xff]  ;;  %v225_v1 = vld [vmem:[%s1422_s1 + $0x88] sm:$0xff]  ;;  %v226_v5 = vld [vmem:[%s1422_s1 + $0x90] sm:$0xff]  ;;  %s1169_s21 = sld [smem:[#allocation2 + $0x83]]  ;;  %s1171_s23 = sld [smem:[#allocation2 + $0x100]] }
  0x3d   : > { %v208_v2 = vld [vmem:[%s1422_s1] sm:$0xff]  ;;  %v753_v3 = vpack.c.bf16 %v225_v1, %v224_v0  ;;  %v209_v4 = vld [vmem:[%s1422_s1 + $0x8] sm:$0xff]  ;;  %v227_v6 = vld [vmem:[%s1422_s1 + $0x98] sm:$0xff]  ;;  %s207_s4 = scalar_lea.vmem %s1423_s0, %s673_s10  ;;  %s1167_s10 = sld [smem:[#allocation2 + $0x82]] }
  0x3e   : > { %v755_v7 = vpack.c.bf16 %v209_v4, %v208_v2  ;;  %v757_v8 = vpack.c.bf16 %v227_v6, %v226_v5  ;;  %v210_v9 = vld [vmem:[%s1422_s1 + $0x10] sm:$0xff]  ;;  %v211_v10 = vld [vmem:[%s1422_s1 + $0x18] sm:$0xff]  ;;  %v228_v11 = vld [vmem:[%s1422_s1 + $0xa0] sm:$0xff]  ;;  %s1173_s26 = sld [smem:[#allocation2 + $0x101]]  ;;  %s1175_s27 = sld [smem:[#allocation2 + $0x102]] }
  0x3f   : > { %754 = vmatprep.subr.bf16.mxu0 %v753_v3  ;;  %v229_v15 = vld [vmem:[%s1422_s1 + $0xa8] sm:$0xff]  ;;  %v759_v16 = vpack.c.bf16 %v211_v10, %v210_v9  ;;  %v212_v18 = vld [vmem:[%s1422_s1 + $0x20] sm:$0xff]  ;;  %v230_v20 = vld [vmem:[%s1422_s1 + $0xb0] sm:$0xff]  ;;  %s1177_s28 = sld [smem:[#allocation2 + $0x103]]  ;;  %s1179_s29 = sld [smem:[#allocation2 + $0x180]]  ;;  %v356_v3 = vstv %s1157_s8 }
  0x40   : > { %756 = vmatpush3.bf16.msra.mxu0 %v755_v7  ;;  %v761_v17 = vpack.c.bf16 %v229_v15, %v228_v11  ;;  %v213_v19 = vld [vmem:[%s1422_s1 + $0x28] sm:$0xff]  ;;  %v231_v21 = vld [vmem:[%s1422_s1 + $0xb8] sm:$0xff]  ;;  %v214_v26 = vld [vmem:[%s1422_s1 + $0x30] sm:$0xff]  ;;  %s1181_s30 = sld [smem:[#allocation2 + $0x181]]  ;;  %s1185_s5 = sld [smem:[#allocation2 + $0x183]]  ;;  %v353_v2 = vstv %s1155_s7 }
  0x41   : > { %758 = vmatprep.subr.bf16.mxu0 %v757_v8  ;;  %v763_v24 = vpack.c.bf16 %v213_v19, %v212_v18  ;;  %v765_v25 = vpack.c.bf16 %v231_v21, %v230_v20  ;;  %v215_v27 = vld [vmem:[%s1422_s1 + $0x38] sm:$0xff]  ;;  %v232_v28 = vld [vmem:[%s1422_s1 + $0xc0] sm:$0xff]  ;;  %v233_v29 = vld [vmem:[%s1422_s1 + $0xc8] sm:$0xff]  ;;  %s1187_s6 = sld [smem:[#allocation2 + $0x200]]  ;;  %s1189_s0 = sld [smem:[#allocation2 + $0x201]]  ;;  %v363_v4 = vstv %s1159_s9 }
  0x42   : > { %v240_v30 = vld [vmem:[%s207_s4] sm:$0x3]  ;;  %v241_v32 = vld [vmem:[%s207_s4 + $0x2] sm:$0x3]  ;;  %v242_v33 = vld [vmem:[%s207_s4 + $0x4] sm:$0x3]  ;;  %v767_v35 = vpack.c.bf16 %v215_v27, %v214_v26  ;;  %v769_v38 = vpack.c.bf16 %v233_v29, %v232_v28  ;;  %v370_v5 = vstv %s1161_s11 }
  0x43   : > { %v243_v34 = vld [vmem:[%s207_s4 + $0x6] sm:$0x3]  ;;  %v248_v36 = vcombine.low %v240_v30, %v241_v32  ;;  %v217_v40 = vld [vmem:[%s1422_s1 + $0x48] sm:$0xff]  ;;  %v234_v41 = vld [vmem:[%s1422_s1 + $0xd0] sm:$0xff]  ;;  %s1183_s4 = sld [smem:[#allocation2 + $0x182]]  ;;  %s1193_s2 = sld [smem:[#allocation2 + $0x203]]  ;;  %v379_v6 = vstv %s1163_s18 }
  0x44   : > { %760 = vmatpush3.bf16.msra.mxu0 %v759_v16  ;;  %v249_v37 = vcombine.low %v242_v33, %v243_v34  ;;  %v216_v39 = vld [vmem:[%s1422_s1 + $0x40] sm:$0xff]  ;;  %v235_v42 = vld [vmem:[%s1422_s1 + $0xd8] sm:$0xff]  ;;  %v218_v48 = vld [vmem:[%s1422_s1 + $0x50] sm:$0xff]  ;;  %s1195_s20 = sld [smem:[#allocation2 + $0x280]]  ;;  %s1197_s16 = sld [smem:[#allocation2 + $0x281]]  ;;  %v382_v7 = vstv %s1165_s19 }
  0x45   : > { %762 = vmatprep.subr.bf16.mxu0 %v761_v17  ;;  %v256_v43 = vrot.slane %v248_v36, %v255_v31  ;;  %v771_v45 = vpack.c.bf16 %v217_v40, %v216_v39  ;;  %v773_v47 = vpack.c.bf16 %v235_v42, %v234_v41  ;;  %v219_v49 = vld [vmem:[%s1422_s1 + $0x58] sm:$0xff]  ;;  %v236_v50 = vld [vmem:[%s1422_s1 + $0xe0] sm:$0xff]  ;;  %v237_v51 = vld [vmem:[%s1422_s1 + $0xe8] sm:$0xff]  ;;  %s1199_s25 = sld [smem:[#allocation2 + $0x282]]  ;;  %s1201_s14 = sld [smem:[#allocation2 + $0x283]]  ;;  %v389_v8 = vstv %s1167_s10 }
  0x46   : > { %v263_v44 = vrot.slane %v249_v37, %v255_v31  ;;  %v775_v53 = vpack.c.bf16 %v219_v49, %v218_v48  ;;  %v777_v54 = vpack.c.bf16 %v237_v51, %v236_v50  ;;  %v220_v55 = vld [vmem:[%s1422_s1 + $0x60] sm:$0xff]  ;;  %v221_v56 = vld [vmem:[%s1422_s1 + $0x68] sm:$0xff]  ;;  %v238_v57 = vld [vmem:[%s1422_s1 + $0xf0] sm:$0xff]  ;;  %s1203_s24 = sld [smem:[#allocation2 + $0x300]]  ;;  %s1205_s12 = sld [smem:[#allocation2 + $0x301]]  ;;  %v396_v9 = vstv %s1169_s21 }
  0x47   : > { %v239_v58 = vld [vmem:[%s1422_s1 + $0xf8] sm:$0xff]  ;;  %v779_v59 = vpack.c.bf16 %v221_v56, %v220_v55  ;;  %v222_v61 = vld [vmem:[%s1422_s1 + $0x70] sm:$0xff]  ;;  %s1207_s17 = sld [smem:[#allocation2 + $0x302]]  ;;  %s1209_s3 = sld [smem:[#allocation2 + $0x303]]  ;;  %v405_v10 = vstv %s1171_s23  ;;  %v408_v11 = vstv %s1173_s26 }
  0x48   : > { %764 = vmatpush3.bf16.msra.mxu0 %v763_v24  ;;  %v265_v46 = vcombine.high %v256_v43, %v263_v44  ;;  %v781_v60 = vpack.c.bf16 %v239_v58, %v238_v57  ;;  %v223_v62 = vld [vmem:[%s1422_s1 + $0x78] sm:$0xff]  ;;  %v264_v63 = vcombine.low %v256_v43, %v263_v44  ;;  %s1191_s1 = sld [smem:[#allocation2 + $0x202]]  ;;  %s1211_s22 = sld [smem:[#allocation2 + $0x380]]  ;;  %v415_v12 = vstv %s1175_s27 }
  0x49   : > { %766 = vmatprep.subr.bf16.mxu0 %v765_v25  ;;  %v783_v0 = vpack.c.bf16 %v223_v62, %v222_v61  ;;  %s1213_s15 = sld [smem:[#allocation2 + $0x381]]  ;;  %s1215_s13 = sld [smem:[#allocation2 + $0x382]]  ;;  %v422_v13 = vstv %s1177_s28  ;;  %v431_v14 = vstv %s1179_s29  ;;  %v434_v15 = vstv %s1181_s30 }
  0x4a   : > { %v279_v52 = vrot.slane %v265_v46, %v255_v31  ;;  %v272_v1 = vrot.slane %v264_v63, %v255_v31  ;;  %v441_v16 = vstv %s1183_s4  ;;  %v448_v17 = vstv %s1185_s5  ;;  %s1426_s8 = sld [smem:[#allocation9_spill]]  ;;  %s955_s9 = smov [#allocation5]  }
  0x4b   : > { %v457_v19 = vstv %s1187_s6  ;;  %v460_v20 = vstv %s1189_s0  ;;  %v474_v22 = vstv %s1193_s2  ;;  %v483_v24 = vstv %s1195_s20  ;;  %s873_s11 = sshll.u32 %s955_s9, 4  ;;  %s874_s11 = int_to_ptr.vmem [resolvable:$false] %s873_s11 }
  0x4c   : > { %768 = vmatpush3.bf16.msra.mxu0 %v767_v35  ;;  %346 = vmatprep.mubr.f32.mxu0 %v279_v52  ;;  %v486_v25 = vstv %s1197_s16  ;;  %v493_v26 = vstv %s1199_s25  ;;  %v500_v27 = vstv %s1201_s14  ;;  %v509_v29 = vstv %s1203_s24  ;;  %s875_s18 = scalar_lea.vmem %s874_s11, 256 }
  0x4d   : > { %770 = vmatprep.subr.bf16.mxu0 %v769_v38  ;;  %1424 = sst [smem:[#allocation18_spill]] %s1207_s17  ;;  %s1221_s17 = sld [smem:[#allocation2 + $0x383]]  ;;  %v512_v30 = vstv %s1205_s12  ;;  %v526_v32 = vstv %s1209_s3 }
  0x4e   : > { %s1425_s7 = sld [smem:[#allocation18_spill]]  ;;  %v467_v21 = vstv %s1191_s1  ;;  %v535_v33 = vstv %s1211_s22  ;;  %s1427_s12 = sld [smem:[#allocation11_spill]] }
  0x4f   : > { %v538_v34 = vstv %s1213_s15  ;;  %v545_v35 = vstv %s1215_s13 }
  0x50   : > { %772 = vmatpush3.bf16.msra.mxu0 %v771_v45  ;;  %s197_s0 = sand.u32 1, %s1426_s8  }
  0x51   : > { %774 = vmatprep.subr.bf16.mxu0 %v773_v47  ;;  %s672_s1 = sshll.u32 %s197_s0, 3  ;;  %s1339_s24 = scalar_lea.sflag [#allocation3], %s197_s0 }
  0x52   : > { %s1274_s2 = scalar_lea.vmem [#allocation5], %s672_s1 }
  0x53   : > { %v552_v39 = vstv %s1221_s17  ;;  %s575_s14 = sshll.u32 %s1274_s2, 4  ;;  %s1429_s17 = sld [smem:[#allocation22_spill]]  ;;  %s1331_s14 = int_to_ptr.vmem [resolvable:$true] %s575_s14 }
  0x54   : > { %776 = vmatpush3.bf16.msra.mxu0 %v775_v53  ;;  %v519_v31 = vstv %s1425_s7  ;;  %s717_s13 = sshll.u32 %s1427_s12, 7  ;;  %s869_s25 = scalar_lea.vmem %s1331_s14, 128 }
  0x55   : > { %778 = vmatprep.subr.bf16.mxu0 %v777_v54  ;;  %p870_p11 = scmp.ne.s32.totalorder %s1331_s14, %s869_s25  ;;  %p876_p0 = scmp.lt.s32.totalorder %s1331_s14, %s874_s11 }
  0x56   : > { %p877_p1 = scmp.lt.s32.totalorder %s875_s18, %s869_s25 }
  0x57   : > { %p871_p12 = pnand %p870_p11, %p1018_p4 }
  0x58   : > { %780 = vmatpush3.bf16.msra.mxu0 %v779_v59  ;;  %p878_p2 = por %p877_p1, %p876_p0 }
  0x59   : > { %782 = vmatprep.subr.bf16.mxu0 %v781_v60  ;;  %s1430_s20 = smov %s1429_s17  ;;  %s1329_s22 = scalar_lea.hbm %s1429_s17, %s717_s13 }
  0x5a   : > { %p872_p13 = pneg %p871_p12 }
  0x5c   : > { %784 = vmatpush3.bf16.msra.mxu0 %v783_v0  ;;  %p879_p3 = pnand %p878_p2, %p872_p13 }
  0x5f   : > { %347 = vmatmul.mubr.f32.vlgmr.msra.gmra.mrb[0].mxu0 %v272_v1 }
 0x132   : > { %v750_v18 = vpop.f32.mrb[0].mxu0 }
 0x133   : > { %v751_v23 = vpop.f32.mrb[1].mxu0 }
 0x134   : > { %v1243_v28 = vadd.f32 %v751_v23, %v750_v18 }
 0x136   : > { %v357_v36 = vmul.f32 %v1243_v28, %v356_v3  ;;  %v364_v37 = vmul.f32 %v1243_v28, %v363_v4  ;;  %v371_v38 = vmul.f32 %v1243_v28, %v370_v5  ;;  %v354_v40 = vmul.f32 %v1243_v28, %v353_v2 }
 0x137   : > { %v383_v41 = vmul.f32 %v1243_v28, %v382_v7  ;;  %v390_v42 = vmul.f32 %v1243_v28, %v389_v8  ;;  %v397_v43 = vmul.f32 %v1243_v28, %v396_v9  ;;  %v380_v47 = vmul.f32 %v1243_v28, %v379_v6 }
 0x138   : > { %v359_v44 = vrot.slane %v357_v36, 1  ;;  %v366_v45 = vrot.slane %v364_v37, 2  ;;  %v373_v46 = vrot.slane %v371_v38, 3  ;;  %v406_v50 = vmul.f32 %v1243_v28, %v405_v10 }
 0x139   : > { %v385_v48 = vrot.slane %v383_v41, 1  ;;  %v392_v49 = vrot.slane %v390_v42, 2  ;;  %v409_v51 = vmul.f32 %v1243_v28, %v408_v11  ;;  %v399_v53 = vrot.slane %v397_v43, 3 }
 0x13a   : > { %v361_v52 = vadd.f32 %v359_v44, %v354_v40  ;;  %v416_v54 = vmul.f32 %v1243_v28, %v415_v12  ;;  %v423_v55 = vmul.f32 %v1243_v28, %v422_v13  ;;  %v435_v58 = vmul.f32 %v1243_v28, %v434_v15 }
 0x13b   : > { %v387_v56 = vadd.f32 %v385_v48, %v380_v47  ;;  %v411_v57 = vrot.slane %v409_v51, 1  ;;  %v442_v59 = vmul.f32 %v1243_v28, %v441_v16  ;;  %v432_v62 = vmul.f32 %v1243_v28, %v431_v14 }
 0x13c   : > { %v368_v60 = vadd.f32 %v366_v45, %v361_v52  ;;  %v418_v61 = vrot.slane %v416_v54, 2  ;;  %v449_v63 = vmul.f32 %v1243_v28, %v448_v17  ;;  %v425_v2 = vrot.slane %v423_v55, 3 }
 0x13d   : > { %v394_v0 = vadd.f32 %v392_v49, %v387_v56  ;;  %v413_v1 = vadd.f32 %v411_v57, %v406_v50  ;;  %v437_v3 = vrot.slane %v435_v58, 1  ;;  %v444_v5 = vrot.slane %v442_v59, 2 }
 0x13e   : > { %v375_v4 = vadd.f32 %v373_v46, %v368_v60  ;;  %v451_v6 = vrot.slane %v449_v63, 3  ;;  %v461_v7 = vmul.f32 %v1243_v28, %v460_v20  ;;  %v468_v11 = vmul.f32 %v1243_v28, %v467_v21 }
 0x13f   : > { %v401_v8 = vadd.f32 %v399_v53, %v394_v0  ;;  %v420_v9 = vadd.f32 %v418_v61, %v413_v1  ;;  %v439_v10 = vadd.f32 %v437_v3, %v432_v62  ;;  %v458_v12 = vmul.f32 %v1243_v28, %v457_v19 }
 0x140   : > { %377 = vst.msk [vmem:[%s1274_s2] sm:$0x1] %vm376_vm0, %v375_v4  ;;  %v463_v13 = vrot.slane %v461_v7, 1  ;;  %v475_v14 = vmul.f32 %v1243_v28, %v474_v22  ;;  %v487_v15 = vmul.f32 %v1243_v28, %v486_v25  ;;  %v484_v18 = vmul.f32 %v1243_v28, %v483_v24 }
 0x141   : > { %681 = vst.msk [vmem:[%s1274_s2 + $0x1] sm:$0x1] %vm376_vm0, %v401_v8  ;;  %v427_v16 = vadd.f32 %v425_v2, %v420_v9  ;;  %v446_v17 = vadd.f32 %v444_v5, %v439_v10  ;;  %v494_v20 = vmul.f32 %v1243_v28, %v493_v26  ;;  %v470_v21 = vrot.slane %v468_v11, 2 }
 0x142   : > { %v465_v19 = vadd.f32 %v463_v13, %v458_v12  ;;  %v489_v22 = vrot.slane %v487_v15, 1  ;;  %v501_v23 = vmul.f32 %v1243_v28, %v500_v27  ;;  %v477_v36 = vrot.slane %v475_v14, 3 }
 0x143   : > { %686 = vst.msk [vmem:[%s1274_s2 + $0x2] sm:$0x1] %vm376_vm0, %v427_v16  ;;  %v453_v25 = vadd.f32 %v451_v6, %v446_v17  ;;  %v496_v37 = vrot.slane %v494_v20, 2  ;;  %v513_v24 = vmul.f32 %v1243_v28, %v512_v30  ;;  %v510_v40 = vmul.f32 %v1243_v28, %v509_v29 }
 0x144   : > { %v472_v38 = vadd.f32 %v470_v21, %v465_v19  ;;  %v491_v26 = vadd.f32 %v489_v22, %v484_v18  ;;  %v520_v27 = vmul.f32 %v1243_v28, %v519_v31  ;;  %v503_v41 = vrot.slane %v501_v23, 3 }
 0x145   : > { %691 = vst.msk [vmem:[%s1274_s2 + $0x3] sm:$0x1] %vm376_vm0, %v453_v25  ;;  %v515_v42 = vrot.slane %v513_v24, 1  ;;  %v527_v43 = vmul.f32 %v1243_v28, %v526_v32  ;;  %v539_v30 = vmul.f32 %v1243_v28, %v538_v34  ;;  %v536_v29 = vmul.f32 %v1243_v28, %v535_v33 }
 0x146   : > { %v479_v44 = vadd.f32 %v477_v36, %v472_v38  ;;  %v498_v45 = vadd.f32 %v496_v37, %v491_v26  ;;  %v546_v31 = vmul.f32 %v1243_v28, %v545_v35  ;;  %v522_v47 = vrot.slane %v520_v27, 2 }
 0x147   : > { %v517_v46 = vadd.f32 %v515_v42, %v510_v40  ;;  %v541_v48 = vrot.slane %v539_v30, 1  ;;  %v553_v32 = vmul.f32 %v1243_v28, %v552_v39  ;;  %v529_v50 = vrot.slane %v527_v43, 3 }
 0x148   : > { %696 = vst.msk [vmem:[%s1274_s2 + $0x4] sm:$0x1] %vm376_vm0, %v479_v44  ;;  %v505_v34 = vadd.f32 %v503_v41, %v498_v45  ;;  %v548_v33 = vrot.slane %v546_v31, 2 }
 0x149   : > { %v524_v49 = vadd.f32 %v522_v47, %v517_v46  ;;  %v543_v51 = vadd.f32 %v541_v48, %v536_v29  ;;  %v555_v53 = vrot.slane %v553_v32, 3 }
 0x14a   : > { %701 = vst.msk [vmem:[%s1274_s2 + $0x5] sm:$0x1] %vm376_vm0, %v505_v34 }
 0x14b   : > { %v531_v35 = vadd.f32 %v529_v50, %v524_v49  ;;  %v550_v52 = vadd.f32 %v548_v33, %v543_v51 }
 0x14d   : > { %706 = vst.msk [vmem:[%s1274_s2 + $0x6] sm:$0x1] %vm376_vm0, %v531_v35  ;;  %v557_v28 = vadd.f32 %v555_v53, %v550_v52 }
 0x14f   : > { %711 = vst.msk [vmem:[%s1274_s2 + $0x7] sm:$0x1] %vm376_vm0, %v557_v28 }
 0x150   : > { %882 = shalt.err (!%p879_p3)
}
 0x151   : > { %s883_s19 = scalar_lea.hbm %s1329_s22, 128  ;;  %s887_s23 = scalar_lea.hbm %s1430_s20, 256 }
 0x152   : > { %p884_p5 = scmp.ne.s32.totalorder %s1329_s22, %s883_s19  ;;  %p888_p9 = scmp.lt.u32.totalorder %s1329_s22, %s1430_s20 }
 0x153   : > { %p889_p10 = scmp.lt.u32.totalorder %s887_s23, %s883_s19  ;;  %p891_p12 = scmp.lt.u32.totalorder %s883_s19, %s1329_s22 }
 0x154   : > { %p885_p6 = pnand %p884_p5, %p1018_p4 }
 0x155   : > { %p890_p11 = por %p889_p10, %p888_p9 }
 0x156   : > { %p886_p7 = pneg %p885_p6 }
 0x157   : > { %p892_p13 = por %p891_p12, %p890_p11 }
 0x159   : > { %p893_p0 = pnand %p892_p13, %p886_p7 }
 0x15b   : > { %896 = shalt.err (!%p893_p0)
}
 0x15c   : > { %s956_s28 = smov 16   ;;  %s957_s29 = smov 1  }
 0x15d   : > { %789 = dma.vmem_to_hbm [thread:$0]  (%p1018_p4), %s1331_s14, 128, %s1329_s22, %s1339_s24, %s956_s28, %s956_s28, %s957_s29  }
 0x15e PF: > { %s1431_s30 = sld [smem:[#allocation13_spill]]  ;;  %s1432_s4 = sld [smem:[#allocation8_spill]] }
 0x164   : > { %p801_p1 = scmp.ge.s32.totalorder %s1431_s30, 2  ;;  %s590_s6 = sand.u32 1, %s1432_s4  }
 0x165   : > { %s591_s7 = scalar_lea.sflag [#allocation3], %s590_s6 }
 0x166   : > { %p796_p2 = pnand %p801_p1, %p1025_p8 }
 0x168   : > { %926 = dma.done.wait (!%p796_p2), %s591_s7, 128  }
 0x169   : > { %928 = vsyncadd (!%p796_p2), %s591_s7, 4294967168  ;;  %s17_s17 = sadd.s32 1, %s1431_s30   ;;  %s1434_s12 = sld [smem:[#allocation9_spill]] }
 0x16a   : > { %p14_p3 = scmp.ge.s32.totalorder %s17_s17, 4   ;;  %s1435_s13 = sld [smem:[#allocation10_spill]] }
 0x16b   : > { %s1436_s14 = sld [smem:[#allocation17_spill]]  ;;  %s1437_s15 = sld [smem:[#allocation12_spill]] }
 0x16c   : > { %s1438_s16 = sld [smem:[#allocation14_spill]]  ;;  %16 = sbr.rel (!%p14_p3) target bundleno = 10 (0xa), region = 79 }
 0x173   :  { %596 = vsyncpa [#allocation3], 1 }
 0x174   :  { %598 = vsyncpa [#allocation3 + $0x1], 1 }
 0x175   :  { %599 = vsyncpa [#allocation4], 1 }
 0x176   :  { %601 = vsyncpa [#allocation4 + $0x1], 1 }

</bundles_post_ra>
